<compile_context>
chip_gen: v7x
topology: tpu7x:2x2x1
jax: 0.10.0
libtpu: 0.0.40
codegen_flags: <defaults>
</compile_context>

<pallas_src>
import jax
import jax.numpy as jnp
from jax.experimental import pallas as pl
from jax.experimental.pallas import tpu as pltpu


def _dropout_mul_kernel(x_ref, n_ref, o_ref):
    # x_ref / o_ref: (1, C_blk, L_blk) data tile.
    # n_ref: (1, Cn, Ln) noise tile with Cn in {1, C_blk}, Ln in {1, L_blk};
    # broadcasting across the shared axes happens on-chip (VPU/XLU), so the
    # expanded mask never touches HBM.
    o_ref[...] = x_ref[...] * n_ref[...]


def spatial_dropout(x, *, drop=0.1, noise_shape=None, training=True, seed=0):
    """JAX/Pallas equivalent of SpatialDropoutshu.forward (NCHW input)."""
    if noise_shape is None:
        noise_shape = (6, 1, 256, 1)  # PyTorch module default

    assert x.ndim == 4, "expected 4-D NCHW input"
    B, C, H, W = x.shape

    # Same fast paths as the PyTorch forward.
    if (not training) or drop == 0:
        return x
    if drop == 1:
        return jnp.zeros_like(x)

    for ns, dim in zip(noise_shape, x.shape):
        assert ns == 1 or ns == dim, (
            f"noise_shape {noise_shape} incompatible with input shape {x.shape}")
    drop_b, drop_c, drop_h, drop_w = (ns == 1 for ns in noise_shape)

    L = H * W
    itemsize = x.dtype.itemsize

    # ---- Bernoulli noise at exactly noise_shape, pre-scaled by 1/(1-drop). ----
    key = jax.random.PRNGKey(seed)
    gen_shape = (1 if drop_b else B, 1 if drop_c else C,
                 1 if drop_h else H, 1 if drop_w else W)
    keep = jax.random.bernoulli(key, p=1.0 - float(drop), shape=gen_shape)
    scale = jnp.asarray(1.0 / (1.0 - float(drop)), dtype=x.dtype)
    noise = keep.astype(x.dtype) * scale

    # Flattened noise layout: keep size-1 broadcast dims for B/C (and for the
    # whole spatial slab when both H and W are shared) so the kernel broadcasts
    # on-chip; only expand the (cheap) spatial axes wrapper-side.
    Bn = 1 if drop_b else B
    Cn = 1 if drop_c else C
    if drop_h and drop_w:
        Ln = 1
        noise = noise.reshape(Bn, Cn, 1)
    else:
        Ln = L
        noise = jnp.broadcast_to(noise, (Bn, Cn, H, W)).reshape(Bn, Cn, L)

    xr = x.reshape(B, C, L)

    # ---- Tile sizes: lane-dense last dim, multi-channel blocks. --------------
    target_bytes = 2 * 1024 * 1024  # per x tile; safe for v7x VMEM w/ 2x buffers
    if L % 128 == 0:
        L_blk = min(L, max(128, (target_bytes // (8 * itemsize)) // 128 * 128))
    else:
        L_blk = L  # unaligned spatial slab: take it whole (block == full dim)

    c_fit = max(1, target_bytes // max(1, L_blk * itemsize))
    if c_fit >= C or C <= 8:
        C_blk = C
    else:
        C_blk = max(8, min(C, (c_fit // 8) * 8 or 8))

    grid = (B, pl.cdiv(C, C_blk), pl.cdiv(L, L_blk))

    n_c_blk = 1 if drop_c else C_blk
    n_l_blk = 1 if Ln == 1 else L_blk

    def x_index(b, c, l):
        return (b, c, l)

    def n_index(b, c, l):
        return (0 if drop_b else b,
                0 if drop_c else c,
                0 if Ln == 1 else l)

    out = pl.pallas_call(
        _dropout_mul_kernel,
        out_shape=jax.ShapeDtypeStruct((B, C, L), x.dtype),
        grid=grid,
        in_specs=[
            pl.BlockSpec((1, C_blk, L_blk), x_index),
            pl.BlockSpec((1, n_c_blk, n_l_blk), n_index),
        ],
        out_specs=pl.BlockSpec((1, C_blk, L_blk), x_index),
        compiler_params=pltpu.CompilerParams(
            dimension_semantics=("parallel", "parallel", "parallel"),
            vmem_limit_bytes=32 * 1024 * 1024),
    )(xr, noise)

    return out.reshape(B, C, H, W)


if __name__ == "__main__":
    key = jax.random.PRNGKey(0)
    B, C, H, W = 2, 4, 16, 16
    x = jax.random.normal(key, (B, C, H, W), dtype=jnp.float32)

    drop = 0.1
    # Same pattern as the module's default (batch, 1, height, 1):
    # one Bernoulli draw per (batch, row), shared across channels and width.
    noise_shape = (B, 1, H, 1)

    y = spatial_dropout(x, drop=drop, noise_shape=noise_shape,
                        training=True, seed=0)
    y = jax.block_until_ready(y)

    # Exact reference: regenerate the same noise the wrapper draws and expand.
    keep_ref = jax.random.bernoulli(jax.random.PRNGKey(0), p=1.0 - drop,
                                    shape=noise_shape)
    scale = 1.0 / (1.0 - drop)
    y_ref = x * (keep_ref.astype(x.dtype) * jnp.asarray(scale, x.dtype))
    assert bool(jnp.allclose(y, y_ref, rtol=1e-6, atol=1e-6)), "mismatch vs reference"

    # Structural checks: every output is either 0 or x / (1 - drop), and the
    # drop pattern is constant along the axes where noise_shape == 1.
    is_zero = jnp.isclose(y, 0.0, atol=1e-7)
    is_scaled = jnp.isclose(y, x * scale, rtol=1e-5, atol=1e-6)
    assert bool(jnp.all(is_zero | is_scaled)), "unexpected output values"

    kept = is_scaled & (jnp.abs(x) > 1e-6)
    ref = kept[:, 0:1, :, 0:1]
    same = jnp.where(jnp.abs(x) > 1e-6, kept == ref, True)
    assert bool(jnp.all(same)), "mask not shared along dropped axes"

    # eval mode / drop==0 return the input untouched; drop==1 zeros everything.
    y_eval = spatial_dropout(x, drop=drop, noise_shape=noise_shape, training=False)
    assert bool(jnp.all(y_eval == x))
    y_one = spatial_dropout(x, drop=1.0, noise_shape=noise_shape, training=True)
    assert bool(jnp.all(y_one == 0))

    print("KERNEL_OK")
</pallas_src>

<mosaic_0001>
module attributes {stable_mosaic.version = 11 : i64} {
  func.func @_dropout_mul_kernel(%arg0: i32, %arg1: i32, %arg2: i32, %arg3: memref<1x4x256xf32, #tpu.memory_space<vmem>>, %arg4: memref<1x1x256xf32, #tpu.memory_space<vmem>>, %arg5: memref<1x4x256xf32, #tpu.memory_space<vmem>>) attributes {dimension_semantics = [#tpu.dimension_semantics<parallel>, #tpu.dimension_semantics<parallel>, #tpu.dimension_semantics<parallel>], iteration_bounds = array<i64: 2, 1, 1>, scalar_prefetch = 0 : i64, scratch_operands = 0 : i64, tpu.core_type = #tpu.core_type<tc>, window_params = [{transform_indices = @transform_0, window_bounds = array<i64: 1, 4, 256>}, {transform_indices = @transform_1, window_bounds = array<i64: 1, 1, 256>}, {transform_indices = @transform_2, window_bounds = array<i64: 1, 4, 256>}]} {
    %c0 = arith.constant 0 : index
    %c0_0 = arith.constant 0 : index
    %c0_1 = arith.constant 0 : index
    %0 = vector.load %arg3[%c0, %c0_0, %c0_1] : memref<1x4x256xf32, #tpu.memory_space<vmem>>, vector<1x4x256xf32>
    %c0_2 = arith.constant 0 : index
    %c0_3 = arith.constant 0 : index
    %c0_4 = arith.constant 0 : index
    %1 = vector.load %arg4[%c0_2, %c0_3, %c0_4] : memref<1x1x256xf32, #tpu.memory_space<vmem>>, vector<1x1x256xf32>
    %2 = vector.broadcast %1 : vector<1x1x256xf32> to vector<1x4x256xf32>
    %3 = arith.mulf %0, %2 : vector<1x4x256xf32>
    %c0_5 = arith.constant 0 : index
    %c0_6 = arith.constant 0 : index
    %c0_7 = arith.constant 0 : index
    %4 = vector.load %arg5[%c0_5, %c0_6, %c0_7] : memref<1x4x256xf32, #tpu.memory_space<vmem>>, vector<1x4x256xf32>
    tpu.vector_store %arg5[%c0_5, %c0_6, %c0_7], %3 {strides = array<i32>} : memref<1x4x256xf32, #tpu.memory_space<vmem>>, vector<1x4x256xf32>,
    return
  }
  func.func @transform_0(%arg0: i32, %arg1: i32, %arg2: i32) -> (i32, i32, i32) {
    %c0_i32 = arith.constant 0 : i32
    return %arg0, %arg1, %arg2 : i32, i32, i32
  }
  func.func @transform_1(%arg0: i32, %arg1: i32, %arg2: i32) -> (i32, i32, i32) {
    %c0_i32 = arith.constant 0 : i32
    %c0_i32_0 = arith.constant 0 : i32
    return %arg0, %c0_i32, %arg2 : i32, i32, i32
  }
  func.func @transform_2(%arg0: i32, %arg1: i32, %arg2: i32) -> (i32, i32, i32) {
    %c0_i32 = arith.constant 0 : i32
    return %arg0, %arg1, %arg2 : i32, i32, i32
  }
}

</mosaic_0001>

<bundles_post_ra>
// kernel: tpu_custom_call.1
= control target key start
LH: loop header
LB: loop body
LE: loop exit
PB: predicated region body
PF: predicated region fallthrough
CT: control target
= control target key end

     0   :  { %7 = vsyncpa [#allocation3], 0  ;;  %s857_s0 = inlined_call_operand.hbm [shape: f32[2,4,256], index: 0, kind: input, shape index: {}]   ;;  %s858_s1 = inlined_call_operand.hbm [shape: f32[2,1,256], index: 1, kind: input, shape index: {}]   ;;  %s859_s2 = inlined_call_operand.hbm [shape: f32[2,4,256], index: 2, kind: output, shape index: {}]  }
   0x1   :  { %9 = vsyncpa [#allocation3 + $0x1], 0 }
   0x2   :  { %10 = vsyncpa [#allocation6], 0 }
   0x3   :  { %12 = vsyncpa [#allocation6 + $0x1], 0 }
   0x4   :  { %13 = vsyncpa [#allocation4], 0 }
   0x5   :  { %15 = vsyncpa [#allocation4 + $0x1], 0  ;;  %s642_s9 = smov 0   ;;  %s644_s10 = smov 0  }
   0x6   :  { %s646_s11 = smov 0   ;;  %s648_s12 = smov 0  }
   0x7   :  { %s650_s13 = smov 0   ;;  %s652_s14 = smov 0  }
   0x8 LB: > { %s387_s15 = sadd.s32 4294967295, %s622_s14   ;;  %s388_s16 = sadd.s32 4294967294, %s622_s14   ;;  %s622_s14 = sphi %s652_s14, %s21_s14   ;;  %s618_s13 = sphi %s650_s13, %s879_s13   ;;  %s614_s12 = sphi %s648_s12, %s878_s12   ;;  %s610_s11 = sphi %s646_s11, %s877_s11   ;;  %s606_s10 = sphi %s644_s10, %s876_s10   ;;  %s602_s9 = sphi %s642_s9, %s875_s9  }
   0x9   : > { %s40_s17 = sadd.s32 1, %s618_s13  ;;  %s51_s18 = sadd.s32 1, %s610_s11 }
   0xa   : > { %p42_p0 = scmp.ge.s32.totalorder %s40_s17, 2  ;;  %p58_p1 = scmp.ne.s32.totalorder %s610_s11, %s606_s10 }
   0xb   : > { %p59_p2 = scmp.eq.s32.totalorder %s622_s14, 0  ;;  %p64_p3 = scmp.ne.s32.totalorder %s606_s10, %s602_s9 }
   0xc   : > { %s881_s17 = smov (%p42_p0, %s40_s17), 0  ;;  %p65_p5 = scmp.eq.s32.totalorder %s387_s15, 0 }
   0xd   : > { %p683_p4 = por %p59_p2, %p58_p1  ;;  %s44_s20 = ssub.s32 %s618_s13, %s881_s17 }
   0xe   : > { %p120_p6 = scmp.eq.s32.totalorder %s387_s15, 1  ;;  %p49_p7 = scmp.eq.s32.totalorder %s44_s20, 0 }
   0xf   : > { %p689_p8 = por %p65_p5, %p64_p3  ;;  %p126_p10 = scmp.eq.s32.totalorder %s388_s16, 1 }
  0x10   : > { %p693_p9 = por %p120_p6, %p58_p1  ;;  %p426_p13 = scmp.lt.s32.totalorder %s622_s14, 2 }
  0x11   : > { %s863_s21 = scalar_select %p689_p8, 1, 0 }
  0x12   : > { %s864_s22 = scalar_select %p693_p9, 1, 0 }
  0x13   : > { %s698_s23 = scalar_select %p49_p7, %s610_s11, %s51_s18  }
  0x14   : > { %p700_p11 = por %p126_p10, %p64_p3  ;;  %s707_s25 = sand.u32 1, %s610_s11  }
  0x15   : > { %s391_s26 = sshll.u32 %s707_s25, 3  ;;  %s406_s27 = sshll.u32 %s618_s13, 7 }
  0x16   : > { %s865_s24 = scalar_select %p700_p11, 1, 0 }
  0x17   : > { %s714_s30 = scalar_lea.hbm %s857_s0, %s406_s27  ;;  %s150_s3 = scalar_lea.vmem [#allocation2], %s391_s26 }
  0x18   : > { %s162_s4 = sshll.u32 %s150_s3, 4  ;;  %p720_p0 = pnand %p426_p13, %p683_p4  ;;  %s716_s4 = int_to_ptr.vmem [resolvable:$true] %s162_s4 }
  0x19   : > { %s147_s6 = scalar_lea.sflag [#allocation3], %s707_s25  ;;  %s476_s7 = scalar_lea.hbm %s714_s30, 128 }
  0x1a   : > { %p477_p3 = scmp.ne.s32.totalorder %s714_s30, %s476_s7  ;;  %p478_p5 = pneg %p720_p0 }
  0x1b   : > { %s481_s16 = scalar_lea.hbm %s857_s0, 256  ;;  %p482_p4 = scmp.lt.u32.totalorder %s714_s30, %s857_s0 }
  0x1c   : > { %p479_p6 = pnand %p478_p5, %p477_p3  ;;  %p483_p10 = scmp.lt.u32.totalorder %s481_s16, %s476_s7 }
  0x1d   : > { %p485_p12 = scmp.lt.u32.totalorder %s476_s7, %s714_s30 }
  0x1e   : > { %p480_p7 = pneg %p479_p6  ;;  %p484_p13 = por %p483_p10, %p482_p4 }
  0x20   : > { %p486_p1 = por %p485_p12, %p484_p13 }
  0x22   : > { %p487_p2 = pnand %p486_p1, %p480_p7 }
  0x24   : > { %490 = shalt.err (!%p487_p2)
}
  0x25   : > { %s491_s20 = scalar_lea.vmem %s716_s4, 128  ;;  %s624_s26 = smov [#allocation2]  }
  0x26   : > { %p492_p3 = scmp.ne.s32.totalorder %s716_s4, %s491_s20  ;;  %s496_s27 = sshll.u32 %s624_s26, 4  ;;  %s497_s27 = int_to_ptr.vmem [resolvable:$false] %s496_s27 }
  0x27   : > { %s498_s28 = scalar_lea.vmem %s497_s27, 256  ;;  %p499_p9 = scmp.lt.s32.totalorder %s716_s4, %s497_s27 }
  0x28   : > { %p494_p6 = pnand %p492_p3, %p478_p5  ;;  %p500_p4 = scmp.lt.s32.totalorder %s498_s28, %s491_s20 }
  0x2a   : > { %p495_p11 = pneg %p494_p6  ;;  %p501_p10 = por %p500_p4, %p499_p9 }
  0x2c   : > { %p502_p12 = pnand %p501_p10, %p495_p11 }
  0x2e   : > { %505 = shalt.err (!%p502_p12)
}
  0x2f   : > { %418 = dma.hbm_to_vmem [thread:$0]  (!%p720_p0), %s714_s30, 128, %s716_s4, %s147_s6  }
  0x30   : > { %p867_p1 = scmp.lt.s32.totalorder %s622_s14, 3  ;;  %p868_p2 = scmp.ge.s32.totalorder %s622_s14, 1 }
  0x31   : > { %s394_s3 = sshll.u32 %s707_s25, 1  ;;  %s407_s7 = sshll.u32 %s618_s13, 5 }
  0x32   : > { %p756_p7 = pnand %p868_p2, %p867_p1  ;;  %s765_s16 = scalar_lea.hbm %s858_s1, %s407_s7 }
  0x33   : > { %s173_s18 = scalar_lea.vmem [#allocation5], %s394_s3  ;;  %s170_s30 = scalar_lea.sflag [#allocation6], %s707_s25 }
  0x34   : > { %s869_s29 = scalar_select %p756_p7, 1, 0 }
  0x35   : > { %s183_s19 = sshll.u32 %s173_s18, 4  ;;  %s506_s4 = scalar_lea.hbm %s765_s16, 32  ;;  %s184_s19 = int_to_ptr.vmem [resolvable:$true] %s183_s19 }
  0x36   : > { %p507_p9 = scmp.ne.s32.totalorder %s765_s16, %s506_s4  ;;  %s511_s26 = scalar_lea.hbm %s858_s1, 64 }
  0x37   : > { %p512_p3 = scmp.lt.u32.totalorder %s765_s16, %s858_s1  ;;  %p513_p6 = scmp.lt.u32.totalorder %s511_s26, %s506_s4 }
  0x38   : > { %p509_p11 = pnand %p507_p9, %p478_p5  ;;  %p515_p10 = scmp.lt.u32.totalorder %s506_s4, %s765_s16 }
  0x39   : > { %p514_p4 = por %p513_p6, %p512_p3 }
  0x3a   : > { %p510_p13 = pneg %p509_p11 }
  0x3b   : > { %p516_p12 = por %p515_p10, %p514_p4 }
  0x3d   : > { %p517_p1 = pnand %p516_p12, %p510_p13 }
  0x3f   : > { %520 = shalt.err (!%p517_p1)
}
  0x40   : > { %s521_s25 = scalar_lea.vmem %s184_s19, 32  ;;  %s625_s3 = smov [#allocation5]  }
  0x41   : > { %p522_p2 = scmp.ne.s32.totalorder %s184_s19, %s521_s25  ;;  %s526_s7 = sshll.u32 %s625_s3, 4  ;;  %s527_s7 = int_to_ptr.vmem [resolvable:$false] %s526_s7 }
  0x42   : > { %s528_s8 = scalar_lea.vmem %s527_s7, 64  ;;  %p529_p8 = scmp.lt.s32.totalorder %s184_s19, %s527_s7 }
  0x43   : > { %p524_p9 = pnand %p522_p2, %p478_p5  ;;  %p530_p7 = scmp.lt.s32.totalorder %s528_s8, %s521_s25 }
  0x45   : > { %p525_p11 = pneg %p524_p9  ;;  %p531_p3 = por %p530_p7, %p529_p8 }
  0x47   : > { %p532_p6 = pnand %p531_p3, %p525_p11 }
  0x49   : > { %535 = shalt.err (!%p532_p6)
}
  0x4a   : > { %421 = dma.hbm_to_vmem [thread:$0]  (!%p720_p0), %s765_s16, 32, %s184_s19, %s170_s30  }
  0x4b   : > { %p870_p13 = scmp.ne.s32.totalorder %s869_s29, 0 }
  0x4c   : > { %s790_s15 = sand.u32 (!%p870_p13), 1, %s606_s10   ;;  %p871_p5 = scmp.ne.s32.totalorder (!%p870_p13), %s863_s21, 0 }
  0x4d   : > { %192 = sbr.rel (%p870_p13) target bundleno = 114 (0x72), region = 28  ;;  %s398_s18 = sshll.u32 (!%p870_p13), %s790_s15, 3 }
  0x4e   : > { %s195_s4 = scalar_lea.sflag (!%p870_p13), [#allocation3], %s790_s15  ;;  %s198_s6 = scalar_lea.vmem (!%p870_p13), [#allocation2], %s398_s18 }
  0x54   : > { %589 = dma.done.wait (%p871_p5), %s195_s4, 128  }
  0x55   : > { %591 = vsyncadd (%p871_p5), %s195_s4, 4294967168  ;;  %s399_s5 = sshll.u32 %s790_s15, 1  ;;  %s204_s29 = scalar_lea.sflag [#allocation6], %s790_s15 }
  0x56   : > { %s207_s16 = scalar_lea.vmem [#allocation5], %s399_s5 }
  0x57   : > { %593 = dma.done.wait (%p871_p5), %s204_s29, 32  }
  0x58   : > { %595 = vsyncadd (%p871_p5), %s204_s29, 4294967264  ;;  %v239_v0 = vlaneseq  ;;  %v237_v4 = vld [vmem:[%s207_s16] sm:$0x3]  ;;  %v236_v7 = vld [vmem:[%s198_s6] sm:$0xff]  ;;  %s232_s19 = scalar_lea.vmem [#allocation7], %s398_s18  ;;  %s408_s20 = sshll.u32 %s614_s12, 7 }
  0x59   : > { %s270_s30 = sshll.u32 %s232_s19, 4  ;;  %s810_s27 = scalar_lea.hbm %s859_s2, %s408_s20  ;;  %s805_s30 = int_to_ptr.vmem [resolvable:$true] %s270_s30 }
  0x5a   : > { %v240_v1 = vshrl.u32 %v239_v0, 7  ;;  %s252_s28 = scalar_lea.sflag [#allocation4], %s790_s15  ;;  %s536_s25 = scalar_lea.vmem %s805_s30, 128 }
  0x5b   : > { %p537_p8 = scmp.ne.s32.totalorder %s805_s30, %s536_s25  ;;  %p872_p0 = scmp.ne.s32.totalorder %s864_s22, 0 }
  0x5c   : > { %v241_v2 = vsub.s32 0, %v240_v1  ;;  %v245_v3 = vsub.s32 1, %v240_v1  ;;  %s626_s12 = smov [#allocation7]  }
  0x5d   : > { %p538_p7 = pnand %p537_p8, %p872_p0  ;;  %s540_s3 = sshll.u32 %s626_s12, 4  ;;  %s541_s3 = int_to_ptr.vmem [resolvable:$false] %s540_s3 }
  0x5e   : > { %v242_v5 = vrot.slane %v237_v4, %v241_v2  ;;  %v246_v6 = vrot.slane %v237_v4, %v245_v3  ;;  %s542_s7 = scalar_lea.vmem %s541_s3, 256  ;;  %p543_p10 = scmp.lt.s32.totalorder %s805_s30, %s541_s3 }
  0x5f   : > { %p539_p4 = pneg %p538_p7  ;;  %p544_p12 = scmp.lt.s32.totalorder %s542_s7, %s536_s25 }
  0x60   : > { %v247_v8 = vcombine.low %v242_v5, %v246_v6 }
  0x61   : > { %p545_p1 = por %p544_p12, %p543_p10 }
  0x62   : > { %v249_v9 = vmul.f32 %v247_v8, %v236_v7 }
  0x63   : > { %p546_p2 = pnand %p545_p1, %p539_p4 }
  0x64   : > { %250 = vst [vmem:[%s232_s19] sm:$0xff] %v249_v9 }
  0x65   : > { %549 = shalt.err (!%p546_p2)
}
  0x66   : > { %s550_s8 = scalar_lea.hbm %s810_s27, 128  ;;  %s554_s4 = scalar_lea.hbm %s859_s2, 256 }
  0x67   : > { %p551_p9 = scmp.ne.s32.totalorder %s810_s27, %s550_s8  ;;  %p555_p6 = scmp.lt.u32.totalorder %s810_s27, %s859_s2 }
  0x68   : > { %p556_p13 = scmp.lt.u32.totalorder %s554_s4, %s550_s8  ;;  %p558_p8 = scmp.lt.u32.totalorder %s550_s8, %s810_s27 }
  0x69   : > { %p552_p11 = pnand %p551_p9, %p872_p0 }
  0x6a   : > { %p557_p5 = por %p556_p13, %p555_p6 }
  0x6b   : > { %p553_p3 = pneg %p552_p11 }
  0x6c   : > { %p559_p7 = por %p558_p8, %p557_p5 }
  0x6e   : > { %p560_p4 = pnand %p559_p7, %p553_p3 }
  0x70   : > { %563 = shalt.err (!%p560_p4)
}
  0x71   : > { %413 = dma.vmem_to_hbm [thread:$0]  (%p872_p0), %s805_s30, 128, %s810_s27, %s252_s28  }
  0x72 PF: > { %s282_s29 = sand.u32 1, %s602_s9   ;;  %p873_p10 = scmp.ne.s32.totalorder %s865_s24, 0 }
  0x73   : > { %p874_p12 = scmp.ge.s32.totalorder %s622_s14, 2  ;;  %s283_s16 = scalar_lea.sflag [#allocation4], %s282_s29 }
  0x75   : > { %p423_p1 = pnand %p874_p12, %p873_p10 }
  0x77   : > { %597 = dma.done.wait (!%p423_p1), %s283_s16, 128  }
  0x78   : > { %599 = vsyncadd (!%p423_p1), %s283_s16, 4294967168  ;;  %s21_s14 = sadd.s32 1, %s622_s14   ;;  %s875_s9 = smov %s606_s10 }
  0x79   : > { %p18_p2 = scmp.ge.s32.totalorder %s21_s14, 4   ;;  %s876_s10 = smov %s610_s11 }
  0x7a   : > { %s877_s11 = smov %s698_s23  ;;  %s878_s12 = smov %s618_s13 }
  0x7b   : > { %s879_s13 = smov %s881_s17  ;;  %20 = sbr.rel (!%p18_p2) target bundleno = 8 (0x8), region = 86 }
  0x82   :  { %288 = vsyncpa [#allocation3], 1 }
  0x83   :  { %290 = vsyncpa [#allocation3 + $0x1], 1 }
  0x84   :  { %291 = vsyncpa [#allocation6], 1 }
  0x85   :  { %293 = vsyncpa [#allocation6 + $0x1], 1 }
  0x86   :  { %294 = vsyncpa [#allocation4], 1 }
  0x87   :  { %296 = vsyncpa [#allocation4 + $0x1], 1 }

</bundles_post_ra>
